<compile_context>
chip_gen: v7x
topology: tpu7x:2x2x1
jax: 0.10.0
libtpu: 0.0.40
codegen_flags: <defaults>
</compile_context>

<pallas_src>
import functools
import math
from typing import NamedTuple

import jax
import jax.numpy as jnp
from jax.experimental import pallas as pl
from jax.experimental.pallas import tpu as pltpu


_VMEM_TILE_BUDGET = 40 * 1024 * 1024  # derate tiles against this (v7x has 64 MiB / TC)


def _round_up(x, m):
    return (x + m - 1) // m * m


class ExpandConvParams(NamedTuple):
    w: jax.Array      # (k_pad, d_model)  scale folded in, optionally bf16
    b: jax.Array      # (1, d_model)      scale folded in, f32
    vocab: int
    d_model: int
    tile_k: int       # K tile actually used (== vocab when vocab <= tile_k)


def prepare_expand_conv_params(weight, bias, d_model, *, tile_k=512, use_bf16=False):
    """One-time parameter prep (call at model init, NOT per forward).

    weight: (vocab, d_model) — PyTorch Conv1d weight (d_model, vocab, 1) transposed.
    bias:   (d_model,)
    """
    vocab = weight.shape[0]
    assert weight.shape == (vocab, d_model)
    assert bias.shape == (d_model,)

    tk = min(vocab, max(8, tile_k))
    if tk < vocab:
        tk = max(8, (tk // 8) * 8)  # K tile must be sublane-aligned when vocab is tiled
    nk = pl.cdiv(vocab, tk)
    k_pad = nk * tk

    scale = math.sqrt(d_model)
    w = weight.astype(jnp.float32) * scale
    if k_pad != vocab:
        # Zero-pad the contraction axis once so ragged K blocks contribute exact zeros.
        w = jnp.pad(w, ((0, k_pad - vocab), (0, 0)))
    w = w.astype(jnp.bfloat16 if use_bf16 else weight.dtype)
    b = (bias.astype(jnp.float32) * scale).reshape(1, d_model)
    return ExpandConvParams(w=w, b=b, vocab=vocab, d_model=d_model, tile_k=tk)


def _dot_kT(x_tile, w_tile):
    # Contract the vocab (first) axis of both operands: (TK, TT) x (TK, N) -> (TT, N),
    # i.e. the result is already in the permuted (time, channel) layout.
    # TODO(synk): if lower_as_mlir shows a per-tile vxpose stealing vector-extended slots
    # at large vocab, pre-transpose the weight to (N, TK) and transpose the small (TT, N)
    # result instead (transpose whichever per-tile object is smaller).
    if x_tile.dtype != w_tile.dtype:
        cd = jnp.promote_types(x_tile.dtype, w_tile.dtype)
        x_tile = x_tile.astype(cd)
        w_tile = w_tile.astype(cd)
    return jax.lax.dot_general(
        x_tile, w_tile,
        dimension_numbers=(((0,), (0,)), ((), ())),
        preferred_element_type=jnp.float32,
    )


def _expand_conv_kernel_direct(x_ref, w_ref, b_ref, o_ref):
    # x_ref: (1, vocab, TT)  w_ref: (vocab, N)  b_ref: (1, N)  o_ref: (1, TT, N)
    o_ref[0] = (_dot_kT(x_ref[0], w_ref[...]) + b_ref[...]).astype(o_ref.dtype)


def _expand_conv_kernel_ktiled(x_ref, w_ref, b_ref, o_ref, acc_ref, *,
                               nk, tk, last_valid_k):
    # Accumulator pattern (P3): K (vocab) is the trailing "arbitrary" grid axis.
    k = pl.program_id(2)

    @pl.when(k == 0)
    def _():
        acc_ref[...] = jnp.zeros_like(acc_ref)

    x_tile = x_ref[0]  # (TK, TT)
    if last_valid_k != tk:
        # Last K block is ragged: rows past `vocab` hold stale VMEM garbage from the
        # clipped DMA; zero them (the weight's pad rows are real zeros from prep).
        rows = jax.lax.broadcasted_iota(jnp.int32, x_tile.shape, 0)
        limit = jnp.where(k == nk - 1, last_valid_k, tk)
        x_tile = jnp.where(rows < limit, x_tile, jnp.zeros_like(x_tile))

    acc_ref[...] += _dot_kT(x_tile, w_ref[...])

    @pl.when(k == nk - 1)
    def _():
        o_ref[0] = (acc_ref[...] + b_ref[...]).astype(o_ref.dtype)


def _const_spec(block_shape, index_map, single_buffer):
    # Constant-index operand: single-buffer it (it is never re-fetched) to save VMEM.
    if single_buffer:
        try:
            return pl.BlockSpec(block_shape, index_map, pipeline_mode=pl.Buffered(1))
        except TypeError:  # older jax without pipeline_mode on BlockSpec
            pass
    return pl.BlockSpec(block_shape, index_map)


def expand_conv(x, params: ExpandConvParams, *, tile_t=512, out_dtype=None):
    """x: (B, vocab, T) in PyTorch NCW layout.

    Returns (B, T, d_model) = Conv1d(k=1)(x).permute(0, 2, 1) * sqrt(d_model).
    For bf16 streaming (halved HBM bytes), prep with use_bf16=True AND pass bf16 x;
    accumulation stays f32 either way.
    """
    B, vocab, T = x.shape
    assert vocab == params.vocab
    N = params.d_model
    tk = params.tile_k
    nk = pl.cdiv(vocab, tk)
    out_dtype = out_dtype or x.dtype

    x_item = jnp.dtype(x.dtype).itemsize
    w_item = jnp.dtype(params.w.dtype).itemsize
    o_item = jnp.dtype(out_dtype).itemsize

    def footprint(tt):
        x_buf = 2 * tk * tt * x_item                      # double-buffered x tiles
        w_buf = (2 if nk > 1 else 1) * tk * N * w_item    # resident weight single-buffered
        b_buf = N * 4
        o_buf = 2 * tt * N * o_item                       # double-buffered out tiles
        acc = (tt * N * 4) if nk > 1 else 0
        return x_buf + w_buf + b_buf + o_buf + acc

    # T tiling: full-array block if T is small, else lane-dense multiples of 128,
    # derated so the pipeline fits the VMEM budget (important on v7x's 64 MiB/TC).
    if T <= tile_t:
        TT = T
    else:
        TT = _round_up(tile_t, 128)
        while footprint(TT) > _VMEM_TILE_BUDGET and TT > 128:
            TT = max(128, (TT // 2 // 128) * 128)
    nt = pl.cdiv(T, TT)
    # TODO(synk): if footprint(128) still exceeds the budget (huge tile_k * d_model),
    # lower tile_k in prepare_expand_conv_params rather than relying on this derate.

    vmem_limit = int(min(max(footprint(TT) + (8 << 20), 32 << 20), 64 << 20))

    cost = pl.CostEstimate(
        flops=2 * B * T * vocab * N,
        transcendentals=0,
        bytes_accessed=(x.size * x_item + params.w.size * w_item
                        + params.b.size * 4 + B * T * N * o_item),
    )
    out_shape = jax.ShapeDtypeStruct((B, T, N), out_dtype)

    def build(single_buffer):
        if nk == 1:
            # Small vocab: weight fully resident, no accumulator needed.
            return pl.pallas_call(
                _expand_conv_kernel_direct,
                out_shape=out_shape,
                grid=(B, nt),
                in_specs=[
                    pl.BlockSpec((1, vocab, TT), lambda b, t: (b, 0, t)),
                    _const_spec((vocab, N), lambda b, t: (0, 0), single_buffer),
                    _const_spec((1, N), lambda b, t: (0, 0), single_buffer),
                ],
                out_specs=pl.BlockSpec((1, TT, N), lambda b, t: (b, t, 0)),
                compiler_params=pltpu.CompilerParams(
                    dimension_semantics=("parallel", "parallel"),
                    vmem_limit_bytes=vmem_limit,
                ),
                cost_estimate=cost,
            )
        kernel = functools.partial(
            _expand_conv_kernel_ktiled,
            nk=nk, tk=tk, last_valid_k=vocab - (nk - 1) * tk,
        )
        return pl.pallas_call(
            kernel,
            out_shape=out_shape,
            grid=(B, nt, nk),
            in_specs=[
                pl.BlockSpec((1, tk, TT), lambda b, t, k: (b, k, t)),
                pl.BlockSpec((tk, N), lambda b, t, k: (k, 0)),
                _const_spec((1, N), lambda b, t, k: (0, 0), single_buffer),
            ],
            out_specs=pl.BlockSpec((1, TT, N), lambda b, t, k: (b, t, 0)),
            scratch_shapes=[pltpu.VMEM((TT, N), jnp.float32)],
            compiler_params=pltpu.CompilerParams(
                dimension_semantics=("parallel", "parallel", "arbitrary"),
                vmem_limit_bytes=vmem_limit,
            ),
            cost_estimate=cost,
        )

    try:
        return build(single_buffer=True)(x, params.w, params.b)
    except Exception:
        # Fallback for jax versions where pl.Buffered(1) on a constant operand is not
        # accepted; double-buffering the tiny parameters is merely a small VMEM waste.
        return build(single_buffer=False)(x, params.w, params.b)


if __name__ == "__main__":
    # Small shapes consistent with the module: x is (batch, vocab, seq).
    B, vocab, T, d_model = 2, 8, 16, 32

    key = jax.random.PRNGKey(0)
    kx, kw, kb = jax.random.split(key, 3)

    x = jax.random.normal(kx, (B, vocab, T), dtype=jnp.float32)
    # PyTorch Conv1d weight is (d_model, vocab, 1); stored transposed as (vocab, d_model).
    weight = jax.random.normal(kw, (vocab, d_model), dtype=jnp.float32) * 0.1
    bias = jax.random.normal(kb, (d_model,), dtype=jnp.float32) * 0.1

    ref = (jnp.einsum("bvt,vd->btd", x, weight) + bias) * math.sqrt(d_model)

    # 1) f32 path, small vocab -> direct resident-weight kernel.
    params = prepare_expand_conv_params(weight, bias, d_model)
    out = jax.block_until_ready(expand_conv(x, params))
    assert out.shape == (B, T, d_model)
    assert jnp.allclose(out, ref, atol=1e-5, rtol=1e-5)

    # 2) bf16 streaming path (f32 accumulation), looser tolerance.
    params_bf16 = prepare_expand_conv_params(weight, bias, d_model, use_bf16=True)
    out_bf16 = jax.block_until_ready(
        expand_conv(x.astype(jnp.bfloat16), params_bf16, out_dtype=jnp.float32))
    assert out_bf16.shape == (B, T, d_model)
    assert jnp.allclose(out_bf16, ref, atol=5e-2, rtol=5e-2)

    # 3) K-tiled accumulator path (large-vocab pattern) with a ragged K tail.
    vocab2 = 20
    kx2, kw2 = jax.random.split(kb, 2)
    x2 = jax.random.normal(kx2, (B, vocab2, T), dtype=jnp.float32)
    w2 = jax.random.normal(kw2, (vocab2, d_model), dtype=jnp.float32) * 0.1
    ref2 = (jnp.einsum("bvt,vd->btd", x2, w2) + bias) * math.sqrt(d_model)
    params2 = prepare_expand_conv_params(w2, bias, d_model, tile_k=8)
    out2 = jax.block_until_ready(expand_conv(x2, params2))
    assert out2.shape == (B, T, d_model)
    assert jnp.allclose(out2, ref2, atol=1e-4, rtol=1e-4)

    print("KERNEL_OK")
</pallas_src>

<mosaic_0001>
module attributes {stable_mosaic.version = 11 : i64} {
  func.func @_expand_conv_kernel_direct(%arg0: i32, %arg1: i32, %arg2: memref<1x8x16xf32, #tpu.memory_space<vmem>>, %arg3: memref<8x32xf32, #tpu.memory_space<vmem>>, %arg4: memref<1x32xf32, #tpu.memory_space<vmem>>, %arg5: memref<1x16x32xf32, #tpu.memory_space<vmem>>) attributes {dimension_semantics = [#tpu.dimension_semantics<parallel>, #tpu.dimension_semantics<parallel>], iteration_bounds = array<i64: 2, 1>, scalar_prefetch = 0 : i64, scratch_operands = 0 : i64, tpu.core_type = #tpu.core_type<tc>, window_params = [{transform_indices = @transform_0, window_bounds = array<i64: 1, 8, 16>}, {pipeline_mode = #tpu.pipeline_mode<synchronous>, transform_indices = @transform_1, window_bounds = array<i64: 8, 32>}, {pipeline_mode = #tpu.pipeline_mode<synchronous>, transform_indices = @transform_2, window_bounds = array<i64: 1, 32>}, {transform_indices = @transform_3, window_bounds = array<i64: 1, 16, 32>}]} {
    %c0 = arith.constant 0 : index
    %c0_0 = arith.constant 0 : index
    %c0_1 = arith.constant 0 : index
    %0 = vector.load %arg2[%c0, %c0_0, %c0_1] : memref<1x8x16xf32, #tpu.memory_space<vmem>>, vector<1x8x16xf32>
    %1 = vector.shape_cast %0 : vector<1x8x16xf32> to vector<8x16xf32>
    %c0_2 = arith.constant 0 : index
    %c0_3 = arith.constant 0 : index
    %2 = vector.load %arg3[%c0_2, %c0_3] : memref<8x32xf32, #tpu.memory_space<vmem>>, vector<8x32xf32>
    %cst = arith.constant dense<0.000000e+00> : vector<16x32xf32>
    %3 = tpu.matmul %1, %2, %cst {dimension_numbers = #tpu.dot_dimension_numbers<[0], [0], [1], [1], [0, 1, 1, 1], [], []>} : vector<8x16xf32>, vector<8x32xf32>, vector<16x32xf32> -> vector<16x32xf32>
    %c0_4 = arith.constant 0 : index
    %c0_5 = arith.constant 0 : index
    %4 = vector.load %arg4[%c0_4, %c0_5] : memref<1x32xf32, #tpu.memory_space<vmem>>, vector<1x32xf32>
    %5 = vector.broadcast %4 : vector<1x32xf32> to vector<16x32xf32>
    %6 = arith.addf %3, %5 : vector<16x32xf32>
    %c0_6 = arith.constant 0 : index
    %c0_7 = arith.constant 0 : index
    %c0_8 = arith.constant 0 : index
    %7 = vector.load %arg5[%c0_6, %c0_7, %c0_8] : memref<1x16x32xf32, #tpu.memory_space<vmem>>, vector<1x16x32xf32>
    %8 = vector.shape_cast %7 : vector<1x16x32xf32> to vector<16x32xf32>
    %9 = vector.shape_cast %6 : vector<16x32xf32> to vector<1x16x32xf32>
    tpu.vector_store %arg5[%c0_6, %c0_7, %c0_8], %9 {strides = array<i32>} : memref<1x16x32xf32, #tpu.memory_space<vmem>>, vector<1x16x32xf32>,
    return
  }
  func.func @transform_0(%arg0: i32, %arg1: i32) -> (i32, i32, i32) {
    %c0_i32 = arith.constant 0 : i32
    %c0_i32_0 = arith.constant 0 : i32
    return %arg0, %c0_i32, %arg1 : i32, i32, i32
  }
  func.func @transform_1(%arg0: i32, %arg1: i32) -> (i32, i32) {
    %c0_i32 = arith.constant 0 : i32
    %c0_i32_0 = arith.constant 0 : i32
    %c0_i32_1 = arith.constant 0 : i32
    return %c0_i32, %c0_i32_0 : i32, i32
  }
  func.func @transform_2(%arg0: i32, %arg1: i32) -> (i32, i32) {
    %c0_i32 = arith.constant 0 : i32
    %c0_i32_0 = arith.constant 0 : i32
    %c0_i32_1 = arith.constant 0 : i32
    return %c0_i32, %c0_i32_0 : i32, i32
  }
  func.func @transform_3(%arg0: i32, %arg1: i32) -> (i32, i32, i32) {
    %c0_i32 = arith.constant 0 : i32
    %c0_i32_0 = arith.constant 0 : i32
    return %arg0, %arg1, %c0_i32 : i32, i32, i32
  }
}

module attributes {stable_mosaic.version = 11 : i64} {
  func.func @_expand_conv_kernel_direct(%arg0: i32, %arg1: i32, %arg2: memref<1x8x16xf32, #tpu.memory_space<vmem>>, %arg3: memref<8x32xf32, #tpu.memory_space<vmem>>, %arg4: memref<1x32xf32, #tpu.memory_space<vmem>>, %arg5: memref<1x16x32xf32, #tpu.memory_space<vmem>>) attributes {dimension_semantics = [#tpu.dimension_semantics<parallel>, #tpu.dimension_semantics<parallel>], iteration_bounds = array<i64: 2, 1>, scalar_prefetch = 0 : i64, scratch_operands = 0 : i64, tpu.core_type = #tpu.core_type<tc>, window_params = [{transform_indices = @transform_0, window_bounds = array<i64: 1, 8, 16>}, {pipeline_mode = #tpu.pipeline_mode<synchronous>, transform_indices = @transform_1, window_bounds = array<i64: 8, 32>}, {pipeline_mode = #tpu.pipeline_mode<synchronous>, transform_indices = @transform_2, window_bounds = array<i64: 1, 32>}, {transform_indices = @transform_3, window_bounds = array<i64: 1, 16, 32>}]} {
    %c0 = arith.constant 0 : index
    %c0_0 = arith.constant 0 : index
    %c0_1 = arith.constant 0 : index
    %0 = vector.load %arg2[%c0, %c0_0, %c0_1] : memref<1x8x16xf32, #tpu.memory_space<vmem>>, vector<1x8x16xf32>
    %1 = vector.shape_cast %0 : vector<1x8x16xf32> to vector<8x16xf32>
    %c0_2 = arith.constant 0 : index
    %c0_3 = arith.constant 0 : index
    %2 = vector.load %arg3[%c0_2, %c0_3] : memref<8x32xf32, #tpu.memory_space<vmem>>, vector<8x32xf32>
    %cst = arith.constant dense<0.000000e+00> : vector<16x32xf32>
    %3 = tpu.matmul %1, %2, %cst {dimension_numbers = #tpu.dot_dimension_numbers<[0], [0], [1], [1], [0, 1, 1, 1], [], []>} : vector<8x16xf32>, vector<8x32xf32>, vector<16x32xf32> -> vector<16x32xf32>
    %c0_4 = arith.constant 0 : index
    %c0_5 = arith.constant 0 : index
    %4 = vector.load %arg4[%c0_4, %c0_5] : memref<1x32xf32, #tpu.memory_space<vmem>>, vector<1x32xf32>
    %5 = vector.broadcast %4 : vector<1x32xf32> to vector<16x32xf32>
    %6 = arith.addf %3, %5 : vector<16x32xf32>
    %c0_6 = arith.constant 0 : index
    %c0_7 = arith.constant 0 : index
    %c0_8 = arith.constant 0 : index
    %7 = vector.load %arg5[%c0_6, %c0_7, %c0_8] : memref<1x16x32xf32, #tpu.memory_space<vmem>>, vector<1x16x32xf32>
    %8 = vector.shape_cast %7 : vector<1x16x32xf32> to vector<16x32xf32>
    %9 = vector.shape_cast %6 : vector<16x32xf32> to vector<1x16x32xf32>
    tpu.vector_store %arg5[%c0_6, %c0_7, %c0_8], %9 {strides = array<i32>} : memref<1x16x32xf32, #tpu.memory_space<vmem>>, vector<1x16x32xf32>,
    return
  }
  func.func @transform_0(%arg0: i32, %arg1: i32) -> (i32, i32, i32) {
    %c0_i32 = arith.constant 0 : i32
    %c0_i32_0 = arith.constant 0 : i32
    return %arg0, %c0_i32, %arg1 : i32, i32, i32
  }
  func.func @transform_1(%arg0: i32, %arg1: i32) -> (i32, i32) {
    %c0_i32 = arith.constant 0 : i32
    %c0_i32_0 = arith.constant 0 : i32
    %c0_i32_1 = arith.constant 0 : i32
    return %c0_i32, %c0_i32_0 : i32, i32
  }
  func.func @transform_2(%arg0: i32, %arg1: i32) -> (i32, i32) {
    %c0_i32 = arith.constant 0 : i32
    %c0_i32_0 = arith.constant 0 : i32
    %c0_i32_1 = arith.constant 0 : i32
    return %c0_i32, %c0_i32_0 : i32, i32
  }
  func.func @transform_3(%arg0: i32, %arg1: i32) -> (i32, i32, i32) {
    %c0_i32 = arith.constant 0 : i32
    %c0_i32_0 = arith.constant 0 : i32
    return %arg0, %arg1, %c0_i32 : i32, i32, i32
  }
}

</mosaic_0001>

<bundles_post_ra>
// kernel: tpu_custom_call.1
= control target key start
LH: loop header
LB: loop body
LE: loop exit
PB: predicated region body
PF: predicated region fallthrough
CT: control target
= control target key end

     0   :  { %8 = vsyncpa [#allocation3], 0  ;;  %s951_s0 = inlined_call_operand.hbm [shape: f32[2,8,16], index: 0, kind: input, shape index: {}]   ;;  %s952_s1 = inlined_call_operand.hbm [shape: f32[8,32], index: 1, kind: input, shape index: {}]   ;;  %s953_s2 = inlined_call_operand.vmem [shape: f32[1,32], index: 2, kind: input, shape index: {}]   ;;  %s954_s3 = inlined_call_operand.hbm [shape: f32[2,16,32], index: 3, kind: output, shape index: {}]  }
   0x1   :  { %10 = vsyncpa [#allocation3 + $0x1], 0 }
   0x2   :  { %11 = vsyncpa [#allocation6], 0 }
   0x3   :  { %12 = vsyncpa [#allocation4], 0 }
   0x4   :  { %14 = vsyncpa [#allocation4 + $0x1], 0  ;;  %s729_s12 = smov 0   ;;  %s731_s13 = smov 0  }
   0x5   :  { %s733_s14 = smov 0   ;;  %s735_s15 = smov 0  }
   0x6   :  { %s737_s16 = smov 0   ;;  %s739_s17 = smov 0  }
   0x7 LB: > { %s454_s18 = sadd.s32 4294967295, %s702_s17   ;;  %s455_s19 = sadd.s32 4294967294, %s702_s17   ;;  %s702_s17 = sphi %s739_s17, %s20_s17   ;;  %s698_s16 = sphi %s737_s16, %s979_s16   ;;  %s694_s15 = sphi %s735_s15, %s978_s15   ;;  %s690_s14 = sphi %s733_s14, %s977_s14   ;;  %s686_s13 = sphi %s731_s13, %s976_s13   ;;  %s682_s12 = sphi %s729_s12, %s975_s12  }
   0x8   : > { %p54_p0 = scmp.ne.s32.totalorder %s686_s13, %s682_s12  ;;  %p763_p1 = scmp.eq.s32.totalorder %s454_s18, 0 }
   0x9   : > { %p767_p2 = scmp.eq.s32.totalorder %s454_s18, 1  ;;  %p128_p3 = scmp.eq.s32.totalorder %s455_s19, 1 }
   0xa   : > { %s959_s20 = scalar_select %p763_p1, 1, 0 }
   0xb   : > { %s960_s21 = scalar_select %p767_p2, 1, 0 }
   0xc   : > { %p773_p4 = por %p763_p1, %p54_p0  ;;  %p456_p5 = scmp.ge.s32.totalorder %s702_s17, 1 }
   0xd   : > { %p778_p6 = por %p128_p3, %p54_p0  ;;  %p135_p7 = scmp.lt.s32.totalorder %s702_s17, 3 }
   0xe   : > { %s961_s22 = scalar_select %p773_p4, 1, 0 }
   0xf   : > { %s962_s23 = scalar_select %p778_p6, 1, 0 }
  0x10   : > { %p783_p8 = pnand %p456_p5, %p135_p7  ;;  %s704_s25 = smov [#allocation5]  }
  0x11   : > { %s148_s26 = sshll.u32 %s704_s25, 4  ;;  %s32_s28 = sadd.s32 1, %s698_s16  ;;  %s149_s26 = int_to_ptr.vmem [resolvable:$true] %s148_s26 }
  0x12   : > { %s963_s24 = scalar_select %p783_p8, 1, 0 }
  0x13   : > { %p490_p10 = pneg %p783_p8  ;;  %s41_s29 = sadd.s32 1, %s690_s14 }
  0x14   : > { %p798_p12 = scmp.ge.s32.totalorder %s32_s28, 2  ;;  %s558_s6 = scalar_lea.hbm %s952_s1, 128 }
  0x15   : > { %p792_p11 = pnand %p490_p10, %p763_p1  ;;  %p559_p13 = scmp.ne.s32.totalorder %s952_s1, %s558_s6 }
  0x16   : > { %s965_s30 = scalar_select %p798_p12, 1, 0 }
  0x17   : > { %p560_p0 = pneg %p792_p11  ;;  %p565_p7 = scmp.lt.u32.totalorder %s558_s6, %s952_s1 }
  0x19   : > { %p561_p3 = pnand %p560_p0, %p559_p13 }
  0x1b   : > { %p562_p5 = pneg %p561_p3 }
  0x1d   : > { %p567_p10 = pnand %p565_p7, %p562_p5 }
  0x1f   : > { %570 = shalt.err (!%p567_p10)
}
  0x20   : > { %s571_s11 = scalar_lea.vmem %s149_s26, 128  ;;  %p579_p4 = scmp.lt.s32.totalorder %s149_s26, %s149_s26 }
  0x21   : > { %p572_p9 = scmp.ne.s32.totalorder %s149_s26, %s571_s11  ;;  %p580_p8 = scmp.lt.s32.totalorder %s571_s11, %s571_s11 }
  0x23   : > { %p574_p6 = pnand %p572_p9, %p560_p0  ;;  %p581_p2 = por %p580_p8, %p579_p4 }
  0x25   : > { %p575_p1 = pneg %p574_p6 }
  0x27   : > { %p582_p12 = pnand %p581_p2, %p575_p1 }
  0x29   : > { %585 = shalt.err (!%p582_p12)
}
  0x2a   : > { %493 = dma.hbm_to_vmem [thread:$0]  (!%p792_p11), %s952_s1, 128, %s149_s26, [#allocation6]  }
  0x2b   : > { %p966_p4 = scmp.ne.s32.totalorder %s965_s30, 0  ;;  %p48_p1 = scmp.ne.s32.totalorder %s690_s14, %s686_s13 }
  0x2c   : > { %p49_p2 = scmp.eq.s32.totalorder %s702_s17, 0  ;;  %p503_p6 = scmp.lt.s32.totalorder %s702_s17, 2 }
  0x2d   : > { %s981_s28 = smov (%p966_p4, %s32_s28), 0  ;;  %p967_p12 = scmp.ne.s32.totalorder %s960_s21, 0 }
  0x2e   : > { %s36_s25 = ssub.s32 %s698_s16, %s981_s28  ;;  %p50_p9 = por %p49_p2, %p48_p1 }
  0x2f   : > { %p39_p8 = scmp.eq.s32.totalorder %s36_s25, 0  ;;  %p830_p13 = por %p967_p12, %p48_p1 }
  0x30   : > { %s162_s4 = sand.u32 1, %s690_s14   ;;  %s460_s30 = sshll.u32 %s698_s16, 7 }
  0x31   : > { %s838_s5 = scalar_select %p39_p8, %s690_s14, %s41_s29  }
  0x32   : > { %s459_s26 = sshll.u32 %s162_s4, 3  ;;  %s844_s8 = scalar_lea.hbm %s951_s0, %s460_s30 }
  0x33   : > { %s166_s21 = scalar_lea.vmem [#allocation2], %s459_s26  ;;  %p848_p11 = pnand %p503_p6, %p50_p9 }
  0x34   : > { %s174_s9 = sshll.u32 %s166_s21, 4  ;;  %s163_s29 = scalar_lea.sflag [#allocation3], %s162_s4  ;;  %s846_s9 = int_to_ptr.vmem [resolvable:$true] %s174_s9 }
  0x35   : > { %s586_s11 = scalar_lea.hbm %s844_s8, 128  ;;  %p588_p3 = pneg %p848_p11 }
  0x36   : > { %p587_p0 = scmp.ne.s32.totalorder %s844_s8, %s586_s11  ;;  %s591_s25 = scalar_lea.hbm %s951_s0, 256 }
  0x37   : > { %p592_p10 = scmp.lt.u32.totalorder %s844_s8, %s951_s0  ;;  %p593_p4 = scmp.lt.u32.totalorder %s591_s25, %s586_s11 }
  0x38   : > { %p589_p5 = pnand %p588_p3, %p587_p0  ;;  %p595_p2 = scmp.lt.u32.totalorder %s586_s11, %s844_s8 }
  0x39   : > { %p594_p1 = por %p593_p4, %p592_p10 }
  0x3a   : > { %p590_p7 = pneg %p589_p5 }
  0x3b   : > { %p596_p6 = por %p595_p2, %p594_p1 }
  0x3d   : > { %p597_p8 = pnand %p596_p6, %p590_p7 }
  0x3f   : > { %600 = shalt.err (!%p597_p8)
}
  0x40   : > { %s601_s4 = scalar_lea.vmem %s846_s9, 128  ;;  %s705_s6 = smov [#allocation2]  }
  0x41   : > { %p602_p9 = scmp.ne.s32.totalorder %s846_s9, %s601_s4  ;;  %s606_s7 = sshll.u32 %s705_s6, 4  ;;  %s607_s7 = int_to_ptr.vmem [resolvable:$false] %s606_s7 }
  0x42   : > { %s608_s21 = scalar_lea.vmem %s607_s7, 256  ;;  %p609_p5 = scmp.lt.s32.totalorder %s846_s9, %s607_s7 }
  0x43   : > { %p604_p12 = pnand %p602_p9, %p588_p3  ;;  %p610_p10 = scmp.lt.s32.totalorder %s608_s21, %s601_s4 }
  0x45   : > { %p605_p0 = pneg %p604_p12  ;;  %p611_p4 = por %p610_p10, %p609_p5 }
  0x47   : > { %p612_p1 = pnand %p611_p4, %p605_p0 }
  0x49   : > { %615 = shalt.err (!%p612_p1)
}
  0x4a   : > { %497 = dma.hbm_to_vmem [thread:$0]  (!%p848_p11), %s844_s8, 128, %s846_s9, %s163_s29  }
  0x4b   : > { %p970_p7 = scmp.ne.s32.totalorder %s963_s24, 0 }
  0x4c   : > { %s880_s11 = sand.u32 (!%p970_p7), 1, %s686_s13   ;;  %p971_p3 = scmp.ne.s32.totalorder (!%p970_p7), %s961_s22, 0 }
  0x4d   : > { %183 = sbr.rel (%p970_p7) target bundleno = 452 (0x1c4), region = 32  ;;  %s462_s18 = sshll.u32 (!%p970_p7), %s880_s11, 3 }
  0x4e   : > { %s186_s19 = scalar_lea.sflag (!%p970_p7), [#allocation3], %s880_s11  ;;  %s189_s25 = scalar_lea.vmem (!%p970_p7), [#allocation2], %s462_s18 }
  0x54   : > { %669 = dma.done.wait (%p971_p3), %s186_s19, 128  }
  0x55   : > { %671 = vsyncadd (%p971_p3), %s186_s19, 4294967168  ;;  %p972_p2 = scmp.ne.s32.totalorder %s959_s20, 0 }
  0x57   : > { %673 = dma.done.wait (%p972_p2), [#allocation6], 128  }
  0x58   : > { %675 = vsyncadd (%p972_p2), [#allocation6], 4294967168  ;;  %v217_v0 = vld [vmem:[%s189_s25] sm:$0xff]  ;;  %v218_v1 = vld [vmem:[#allocation5] sm:$0xff]  ;;  %vm258_vm0 = vcmask 64512   ;;  %s464_s22 = sshll.u32 %s880_s11, 4 }
  0x59   : > { %226 = vxpose.xlu0.b32.start.end [1/1] (short) (narrow) %v217_v0, 16  ;;  %477 = vmatprep.subr.mxu0 %v218_v1  ;;  %s215_s24 = scalar_lea.vmem [#allocation7], %s464_s22  ;;  %v465_v4 = vld [vmem:[%s953_s2] ss:$0 sm:$0xff]  ;;  %s473_s10 = sshll.u32 %s694_s15, 8  ;;  %vm340_vm1 = vcmask 261120  }
  0x5a   : > { %478 = vmatpush3.msra.mxu0 %v218_v1  ;;  %s359_s8 = sshll.u32 %s215_s24, 4  ;;  %s902_s30 = scalar_lea.hbm %s954_s3, %s473_s10  ;;  %s897_s8 = int_to_ptr.vmem [resolvable:$true] %s359_s8 }
  0x5b   : > { %s344_s4 = scalar_lea.sflag [#allocation4], %s880_s11  ;;  %s616_s6 = scalar_lea.vmem %s897_s8, 256 }
  0x5c   : > { %p617_p11 = scmp.ne.s32.totalorder %s897_s8, %s616_s6  ;;  %s706_s15 = smov [#allocation7]  }
  0x5d   : > { %s620_s7 = sshll.u32 %s706_s15, 4  ;;  %s621_s7 = int_to_ptr.vmem [resolvable:$false] %s620_s7 }
  0x5e   : > { %p618_p6 = pnand %p617_p11, %p830_p13  ;;  %s622_s21 = scalar_lea.vmem %s621_s7, 512 }
  0x5f   : > { %p623_p9 = scmp.lt.s32.totalorder %s897_s8, %s621_s7  ;;  %p624_p12 = scmp.lt.s32.totalorder %s622_s21, %s616_s6 }
  0x60   : > { %p619_p8 = pneg %p618_p6 }
  0x61   : > { %p625_p0 = por %p624_p12, %p623_p9 }
  0x63   : > { %p626_p5 = pnand %p625_p0, %p619_p8 }
  0xd9   : > { %v242_v2 = vpop.trf.xlu0 }
  0xda   : > { %479 = vmatprep.mubr.msk.f32.mxu0 %vm258_vm0, %v242_v2 }
  0xdd   : > { %v243_v3 = vpop.trf.xlu0 }
  0xde   : > { %480 = vmatmul.mubr.msk.f32.vlgmr.msra.gmra.mrb[0].mxu0 %vm258_vm0, %v243_v3 }
 0x1b1   : > { %v481_v5 = vpop.f32.mrb[0].mxu0 }
 0x1b2   : > { %v337_v6 = vadd.f32 %v481_v5, %v465_v4  ;;  %v331_v7 = vpop.f32.mrb[1].mxu0 }
 0x1b3   : > { %v332_v8 = vadd.f32 %v465_v4, %v331_v7 }
 0x1b4   : > { %342 = vst.msk [vmem:[%s215_s24 + $0x8] sm:$0xff] %vm340_vm1, %v337_v6 }
 0x1b5   : > { %341 = vst.msk [vmem:[%s215_s24] sm:$0xff] %vm340_vm1, %v332_v8 }
 0x1b6   : > { %629 = shalt.err (!%p626_p5)
}
 0x1b7   : > { %s630_s18 = scalar_lea.hbm %s902_s30, 256  ;;  %s634_s22 = scalar_lea.hbm %s954_s3, 512 }
 0x1b8   : > { %p631_p10 = scmp.ne.s32.totalorder %s902_s30, %s630_s18  ;;  %p635_p7 = scmp.lt.u32.totalorder %s902_s30, %s954_s3 }
 0x1b9   : > { %p636_p3 = scmp.lt.u32.totalorder %s634_s22, %s630_s18  ;;  %p638_p11 = scmp.lt.u32.totalorder %s630_s18, %s902_s30 }
 0x1ba   : > { %p632_p4 = pnand %p631_p10, %p830_p13 }
 0x1bb   : > { %p637_p2 = por %p636_p3, %p635_p7 }
 0x1bc   : > { %p633_p1 = pneg %p632_p4 }
 0x1bd   : > { %p639_p6 = por %p638_p11, %p637_p2 }
 0x1bf   : > { %p640_p8 = pnand %p639_p6, %p633_p1 }
 0x1c1   : > { %643 = shalt.err (!%p640_p8)
}
 0x1c2   : > { %s707_s20 = smov 128   ;;  %s708_s10 = smov 8  }
 0x1c3   : > { %488 = dma.vmem_to_hbm [thread:$0]  (%p830_p13), %s897_s8, 256, %s902_s30, %s344_s4, %s707_s20, %s707_s20, %s708_s10  }
 0x1c4 PF: > { %s374_s29 = sand.u32 1, %s682_s12   ;;  %p973_p9 = scmp.ne.s32.totalorder %s962_s23, 0 }
 0x1c5   : > { %p974_p12 = scmp.ge.s32.totalorder %s702_s17, 2  ;;  %s375_s26 = scalar_lea.sflag [#allocation4], %s374_s29 }
 0x1c7   : > { %p499_p0 = pnand %p974_p12, %p973_p9 }
 0x1c9   : > { %677 = dma.done.wait (!%p499_p0), %s375_s26, 256  }
 0x1ca   : > { %679 = vsyncadd (!%p499_p0), %s375_s26, 4294967040  ;;  %s20_s17 = sadd.s32 1, %s702_s17   ;;  %s975_s12 = smov %s686_s13 }
 0x1cb   : > { %p17_p5 = scmp.ge.s32.totalorder %s20_s17, 4   ;;  %s976_s13 = smov %s690_s14 }
 0x1cc   : > { %s977_s14 = smov %s838_s5  ;;  %s978_s15 = smov %s698_s16 }
 0x1cd   : > { %s979_s16 = smov %s981_s28  ;;  %19 = sbr.rel (!%p17_p5) target bundleno = 7 (0x7), region = 81 }
 0x1d4   :  { %380 = vsyncpa [#allocation3], 1 }
 0x1d5   :  { %382 = vsyncpa [#allocation3 + $0x1], 1 }
 0x1d6   :  { %383 = vsyncpa [#allocation6], 1 }
 0x1d7   :  { %384 = vsyncpa [#allocation4], 1 }
 0x1d8   :  { %386 = vsyncpa [#allocation4 + $0x1], 1 }

// kernel: tpu_custom_call.1
= control target key start
LH: loop header
LB: loop body
LE: loop exit
PB: predicated region body
PF: predicated region fallthrough
CT: control target
= control target key end

     0   :  { %8 = vsyncpa [#allocation3], 0  ;;  %s951_s0 = inlined_call_operand.hbm [shape: f32[2,8,16], index: 0, kind: input, shape index: {}]   ;;  %s952_s1 = inlined_call_operand.hbm [shape: f32[8,32], index: 1, kind: input, shape index: {}]   ;;  %s953_s2 = inlined_call_operand.vmem [shape: f32[1,32], index: 2, kind: input, shape index: {}]   ;;  %s954_s3 = inlined_call_operand.hbm [shape: f32[2,16,32], index: 3, kind: output, shape index: {}]  }
   0x1   :  { %10 = vsyncpa [#allocation3 + $0x1], 0 }
   0x2   :  { %11 = vsyncpa [#allocation6], 0 }
   0x3   :  { %12 = vsyncpa [#allocation4], 0 }
   0x4   :  { %14 = vsyncpa [#allocation4 + $0x1], 0  ;;  %s729_s12 = smov 0   ;;  %s731_s13 = smov 0  }
   0x5   :  { %s733_s14 = smov 0   ;;  %s735_s15 = smov 0  }
   0x6   :  { %s737_s16 = smov 0   ;;  %s739_s17 = smov 0  }
   0x7 LB: > { %s454_s18 = sadd.s32 4294967295, %s702_s17   ;;  %s455_s19 = sadd.s32 4294967294, %s702_s17   ;;  %s702_s17 = sphi %s739_s17, %s20_s17   ;;  %s698_s16 = sphi %s737_s16, %s979_s16   ;;  %s694_s15 = sphi %s735_s15, %s978_s15   ;;  %s690_s14 = sphi %s733_s14, %s977_s14   ;;  %s686_s13 = sphi %s731_s13, %s976_s13   ;;  %s682_s12 = sphi %s729_s12, %s975_s12  }
   0x8   : > { %p54_p0 = scmp.ne.s32.totalorder %s686_s13, %s682_s12  ;;  %p763_p1 = scmp.eq.s32.totalorder %s454_s18, 0 }
   0x9   : > { %p767_p2 = scmp.eq.s32.totalorder %s454_s18, 1  ;;  %p128_p3 = scmp.eq.s32.totalorder %s455_s19, 1 }
   0xa   : > { %s959_s20 = scalar_select %p763_p1, 1, 0 }
   0xb   : > { %s960_s21 = scalar_select %p767_p2, 1, 0 }
   0xc   : > { %p773_p4 = por %p763_p1, %p54_p0  ;;  %p456_p5 = scmp.ge.s32.totalorder %s702_s17, 1 }
   0xd   : > { %p778_p6 = por %p128_p3, %p54_p0  ;;  %p135_p7 = scmp.lt.s32.totalorder %s702_s17, 3 }
   0xe   : > { %s961_s22 = scalar_select %p773_p4, 1, 0 }
   0xf   : > { %s962_s23 = scalar_select %p778_p6, 1, 0 }
  0x10   : > { %p783_p8 = pnand %p456_p5, %p135_p7  ;;  %s704_s25 = smov [#allocation5]  }
  0x11   : > { %s148_s26 = sshll.u32 %s704_s25, 4  ;;  %s32_s28 = sadd.s32 1, %s698_s16  ;;  %s149_s26 = int_to_ptr.vmem [resolvable:$true] %s148_s26 }
  0x12   : > { %s963_s24 = scalar_select %p783_p8, 1, 0 }
  0x13   : > { %p490_p10 = pneg %p783_p8  ;;  %s41_s29 = sadd.s32 1, %s690_s14 }
  0x14   : > { %p798_p12 = scmp.ge.s32.totalorder %s32_s28, 2  ;;  %s558_s6 = scalar_lea.hbm %s952_s1, 128 }
  0x15   : > { %p792_p11 = pnand %p490_p10, %p763_p1  ;;  %p559_p13 = scmp.ne.s32.totalorder %s952_s1, %s558_s6 }
  0x16   : > { %s965_s30 = scalar_select %p798_p12, 1, 0 }
  0x17   : > { %p560_p0 = pneg %p792_p11  ;;  %p565_p7 = scmp.lt.u32.totalorder %s558_s6, %s952_s1 }
  0x19   : > { %p561_p3 = pnand %p560_p0, %p559_p13 }
  0x1b   : > { %p562_p5 = pneg %p561_p3 }
  0x1d   : > { %p567_p10 = pnand %p565_p7, %p562_p5 }
  0x1f   : > { %570 = shalt.err (!%p567_p10)
}
  0x20   : > { %s571_s11 = scalar_lea.vmem %s149_s26, 128  ;;  %p579_p4 = scmp.lt.s32.totalorder %s149_s26, %s149_s26 }
  0x21   : > { %p572_p9 = scmp.ne.s32.totalorder %s149_s26, %s571_s11  ;;  %p580_p8 = scmp.lt.s32.totalorder %s571_s11, %s571_s11 }
  0x23   : > { %p574_p6 = pnand %p572_p9, %p560_p0  ;;  %p581_p2 = por %p580_p8, %p579_p4 }
  0x25   : > { %p575_p1 = pneg %p574_p6 }
  0x27   : > { %p582_p12 = pnand %p581_p2, %p575_p1 }
  0x29   : > { %585 = shalt.err (!%p582_p12)
}
  0x2a   : > { %493 = dma.hbm_to_vmem [thread:$0]  (!%p792_p11), %s952_s1, 128, %s149_s26, [#allocation6]  }
  0x2b   : > { %p966_p4 = scmp.ne.s32.totalorder %s965_s30, 0  ;;  %p48_p1 = scmp.ne.s32.totalorder %s690_s14, %s686_s13 }
  0x2c   : > { %p49_p2 = scmp.eq.s32.totalorder %s702_s17, 0  ;;  %p503_p6 = scmp.lt.s32.totalorder %s702_s17, 2 }
  0x2d   : > { %s981_s28 = smov (%p966_p4, %s32_s28), 0  ;;  %p967_p12 = scmp.ne.s32.totalorder %s960_s21, 0 }
  0x2e   : > { %s36_s25 = ssub.s32 %s698_s16, %s981_s28  ;;  %p50_p9 = por %p49_p2, %p48_p1 }
  0x2f   : > { %p39_p8 = scmp.eq.s32.totalorder %s36_s25, 0  ;;  %p830_p13 = por %p967_p12, %p48_p1 }
  0x30   : > { %s162_s4 = sand.u32 1, %s690_s14   ;;  %s460_s30 = sshll.u32 %s698_s16, 7 }
  0x31   : > { %s838_s5 = scalar_select %p39_p8, %s690_s14, %s41_s29  }
  0x32   : > { %s459_s26 = sshll.u32 %s162_s4, 3  ;;  %s844_s8 = scalar_lea.hbm %s951_s0, %s460_s30 }
  0x33   : > { %s166_s21 = scalar_lea.vmem [#allocation2], %s459_s26  ;;  %p848_p11 = pnand %p503_p6, %p50_p9 }
  0x34   : > { %s174_s9 = sshll.u32 %s166_s21, 4  ;;  %s163_s29 = scalar_lea.sflag [#allocation3], %s162_s4  ;;  %s846_s9 = int_to_ptr.vmem [resolvable:$true] %s174_s9 }
  0x35   : > { %s586_s11 = scalar_lea.hbm %s844_s8, 128  ;;  %p588_p3 = pneg %p848_p11 }
  0x36   : > { %p587_p0 = scmp.ne.s32.totalorder %s844_s8, %s586_s11  ;;  %s591_s25 = scalar_lea.hbm %s951_s0, 256 }
  0x37   : > { %p592_p10 = scmp.lt.u32.totalorder %s844_s8, %s951_s0  ;;  %p593_p4 = scmp.lt.u32.totalorder %s591_s25, %s586_s11 }
  0x38   : > { %p589_p5 = pnand %p588_p3, %p587_p0  ;;  %p595_p2 = scmp.lt.u32.totalorder %s586_s11, %s844_s8 }
  0x39   : > { %p594_p1 = por %p593_p4, %p592_p10 }
  0x3a   : > { %p590_p7 = pneg %p589_p5 }
  0x3b   : > { %p596_p6 = por %p595_p2, %p594_p1 }
  0x3d   : > { %p597_p8 = pnand %p596_p6, %p590_p7 }
  0x3f   : > { %600 = shalt.err (!%p597_p8)
}
  0x40   : > { %s601_s4 = scalar_lea.vmem %s846_s9, 128  ;;  %s705_s6 = smov [#allocation2]  }
  0x41   : > { %p602_p9 = scmp.ne.s32.totalorder %s846_s9, %s601_s4  ;;  %s606_s7 = sshll.u32 %s705_s6, 4  ;;  %s607_s7 = int_to_ptr.vmem [resolvable:$false] %s606_s7 }
  0x42   : > { %s608_s21 = scalar_lea.vmem %s607_s7, 256  ;;  %p609_p5 = scmp.lt.s32.totalorder %s846_s9, %s607_s7 }
  0x43   : > { %p604_p12 = pnand %p602_p9, %p588_p3  ;;  %p610_p10 = scmp.lt.s32.totalorder %s608_s21, %s601_s4 }
  0x45   : > { %p605_p0 = pneg %p604_p12  ;;  %p611_p4 = por %p610_p10, %p609_p5 }
  0x47   : > { %p612_p1 = pnand %p611_p4, %p605_p0 }
  0x49   : > { %615 = shalt.err (!%p612_p1)
}
  0x4a   : > { %497 = dma.hbm_to_vmem [thread:$0]  (!%p848_p11), %s844_s8, 128, %s846_s9, %s163_s29  }
  0x4b   : > { %p970_p7 = scmp.ne.s32.totalorder %s963_s24, 0 }
  0x4c   : > { %s880_s11 = sand.u32 (!%p970_p7), 1, %s686_s13   ;;  %p971_p3 = scmp.ne.s32.totalorder (!%p970_p7), %s961_s22, 0 }
  0x4d   : > { %183 = sbr.rel (%p970_p7) target bundleno = 452 (0x1c4), region = 32  ;;  %s462_s18 = sshll.u32 (!%p970_p7), %s880_s11, 3 }
  0x4e   : > { %s186_s19 = scalar_lea.sflag (!%p970_p7), [#allocation3], %s880_s11  ;;  %s189_s25 = scalar_lea.vmem (!%p970_p7), [#allocation2], %s462_s18 }
  0x54   : > { %669 = dma.done.wait (%p971_p3), %s186_s19, 128  }
  0x55   : > { %671 = vsyncadd (%p971_p3), %s186_s19, 4294967168  ;;  %p972_p2 = scmp.ne.s32.totalorder %s959_s20, 0 }
  0x57   : > { %673 = dma.done.wait (%p972_p2), [#allocation6], 128  }
  0x58   : > { %675 = vsyncadd (%p972_p2), [#allocation6], 4294967168  ;;  %v217_v0 = vld [vmem:[%s189_s25] sm:$0xff]  ;;  %v218_v1 = vld [vmem:[#allocation5] sm:$0xff]  ;;  %vm258_vm0 = vcmask 64512   ;;  %s464_s22 = sshll.u32 %s880_s11, 4 }
  0x59   : > { %226 = vxpose.xlu0.b32.start.end [1/1] (short) (narrow) %v217_v0, 16  ;;  %477 = vmatprep.subr.mxu0 %v218_v1  ;;  %s215_s24 = scalar_lea.vmem [#allocation7], %s464_s22  ;;  %v465_v4 = vld [vmem:[%s953_s2] ss:$0 sm:$0xff]  ;;  %s473_s10 = sshll.u32 %s694_s15, 8  ;;  %vm340_vm1 = vcmask 261120  }
  0x5a   : > { %478 = vmatpush3.msra.mxu0 %v218_v1  ;;  %s359_s8 = sshll.u32 %s215_s24, 4  ;;  %s902_s30 = scalar_lea.hbm %s954_s3, %s473_s10  ;;  %s897_s8 = int_to_ptr.vmem [resolvable:$true] %s359_s8 }
  0x5b   : > { %s344_s4 = scalar_lea.sflag [#allocation4], %s880_s11  ;;  %s616_s6 = scalar_lea.vmem %s897_s8, 256 }
  0x5c   : > { %p617_p11 = scmp.ne.s32.totalorder %s897_s8, %s616_s6  ;;  %s706_s15 = smov [#allocation7]  }
  0x5d   : > { %s620_s7 = sshll.u32 %s706_s15, 4  ;;  %s621_s7 = int_to_ptr.vmem [resolvable:$false] %s620_s7 }
  0x5e   : > { %p618_p6 = pnand %p617_p11, %p830_p13  ;;  %s622_s21 = scalar_lea.vmem %s621_s7, 512 }
  0x5f   : > { %p623_p9 = scmp.lt.s32.totalorder %s897_s8, %s621_s7  ;;  %p624_p12 = scmp.lt.s32.totalorder %s622_s21, %s616_s6 }
  0x60   : > { %p619_p8 = pneg %p618_p6 }
  0x61   : > { %p625_p0 = por %p624_p12, %p623_p9 }
  0x63   : > { %p626_p5 = pnand %p625_p0, %p619_p8 }
  0xd9   : > { %v242_v2 = vpop.trf.xlu0 }
  0xda   : > { %479 = vmatprep.mubr.msk.f32.mxu0 %vm258_vm0, %v242_v2 }
  0xdd   : > { %v243_v3 = vpop.trf.xlu0 }
  0xde   : > { %480 = vmatmul.mubr.msk.f32.vlgmr.msra.gmra.mrb[0].mxu0 %vm258_vm0, %v243_v3 }
 0x1b1   : > { %v481_v5 = vpop.f32.mrb[0].mxu0 }
 0x1b2   : > { %v337_v6 = vadd.f32 %v481_v5, %v465_v4  ;;  %v331_v7 = vpop.f32.mrb[1].mxu0 }
 0x1b3   : > { %v332_v8 = vadd.f32 %v465_v4, %v331_v7 }
 0x1b4   : > { %342 = vst.msk [vmem:[%s215_s24 + $0x8] sm:$0xff] %vm340_vm1, %v337_v6 }
 0x1b5   : > { %341 = vst.msk [vmem:[%s215_s24] sm:$0xff] %vm340_vm1, %v332_v8 }
 0x1b6   : > { %629 = shalt.err (!%p626_p5)
}
 0x1b7   : > { %s630_s18 = scalar_lea.hbm %s902_s30, 256  ;;  %s634_s22 = scalar_lea.hbm %s954_s3, 512 }
 0x1b8   : > { %p631_p10 = scmp.ne.s32.totalorder %s902_s30, %s630_s18  ;;  %p635_p7 = scmp.lt.u32.totalorder %s902_s30, %s954_s3 }
 0x1b9   : > { %p636_p3 = scmp.lt.u32.totalorder %s634_s22, %s630_s18  ;;  %p638_p11 = scmp.lt.u32.totalorder %s630_s18, %s902_s30 }
 0x1ba   : > { %p632_p4 = pnand %p631_p10, %p830_p13 }
 0x1bb   : > { %p637_p2 = por %p636_p3, %p635_p7 }
 0x1bc   : > { %p633_p1 = pneg %p632_p4 }
 0x1bd   : > { %p639_p6 = por %p638_p11, %p637_p2 }
 0x1bf   : > { %p640_p8 = pnand %p639_p6, %p633_p1 }
 0x1c1   : > { %643 = shalt.err (!%p640_p8)
}
 0x1c2   : > { %s707_s20 = smov 128   ;;  %s708_s10 = smov 8  }
 0x1c3   : > { %488 = dma.vmem_to_hbm [thread:$0]  (%p830_p13), %s897_s8, 256, %s902_s30, %s344_s4, %s707_s20, %s707_s20, %s708_s10  }
 0x1c4 PF: > { %s374_s29 = sand.u32 1, %s682_s12   ;;  %p973_p9 = scmp.ne.s32.totalorder %s962_s23, 0 }
 0x1c5   : > { %p974_p12 = scmp.ge.s32.totalorder %s702_s17, 2  ;;  %s375_s26 = scalar_lea.sflag [#allocation4], %s374_s29 }
 0x1c7   : > { %p499_p0 = pnand %p974_p12, %p973_p9 }
 0x1c9   : > { %677 = dma.done.wait (!%p499_p0), %s375_s26, 256  }
 0x1ca   : > { %679 = vsyncadd (!%p499_p0), %s375_s26, 4294967040  ;;  %s20_s17 = sadd.s32 1, %s702_s17   ;;  %s975_s12 = smov %s686_s13 }
 0x1cb   : > { %p17_p5 = scmp.ge.s32.totalorder %s20_s17, 4   ;;  %s976_s13 = smov %s690_s14 }
 0x1cc   : > { %s977_s14 = smov %s838_s5  ;;  %s978_s15 = smov %s698_s16 }
 0x1cd   : > { %s979_s16 = smov %s981_s28  ;;  %19 = sbr.rel (!%p17_p5) target bundleno = 7 (0x7), region = 81 }
 0x1d4   :  { %380 = vsyncpa [#allocation3], 1 }
 0x1d5   :  { %382 = vsyncpa [#allocation3 + $0x1], 1 }
 0x1d6   :  { %383 = vsyncpa [#allocation6], 1 }
 0x1d7   :  { %384 = vsyncpa [#allocation4], 1 }
 0x1d8   :  { %386 = vsyncpa [#allocation4 + $0x1], 1 }

</bundles_post_ra>
